<compile_context>
chip_gen: v5e
topology: v5e:2x2
jax: 0.10.0
libtpu: 0.0.40
codegen_flags: <defaults>
</compile_context>

<pallas_src>
import functools

import jax
import jax.numpy as jnp
import numpy as np
from jax.experimental import pallas as pl
from jax.experimental.pallas import tpu as pltpu

EPS = 1e-5  # torch.nn.BatchNorm2d default


def resblock_kernel(x_ref, wb_ref, gb_ref, out_ref, *, H, W, C, inv_count):
    """Whole ResBlock in one invocation (lane-dense folded layout).

    x_ref  : (N*H, W*C)        folded NHWC input (f32)
    wb_ref : (2, 3*W*C, W*C)   fused banded conv weights (one per conv); the 3
                               dy bands are stacked along K in order
                               (dy=-1, 0, +1); dx shift + width-boundary zeros
                               baked in.  f32 or bf16 (MXU operand dtype).
    gb_ref : (4, W*C)          BN affine params tiled over W: g1, b1, g2, b2
    out_ref: (N*H, W*C)
    """
    f32 = jnp.float32
    x = x_ref[...].astype(f32)
    NH, WC = x.shape
    mxu_dtype = wb_ref.dtype

    # per-row "y within image" index -> dy-halo boundary masks (no extra DMA)
    y_img = jax.lax.broadcasted_iota(jnp.int32, (NH, WC), 0) % H
    not_top = y_img != 0
    not_bot = y_img != (H - 1)

    def conv3x3(z, w):
        # dy halo via sublane rolls + boundary masks (XLU/VPU, free next to MXU)
        up = jnp.where(not_top, pltpu.roll(z, shift=1, axis=0), 0.0)
        dn = jnp.where(not_bot, pltpu.roll(z, shift=NH - 1, axis=0), 0.0)
        # single fused K = 3*WC dot: one MXU weight push, one result drain
        lhs = jnp.concatenate([up, z, dn], axis=1).astype(mxu_dtype)
        return jnp.dot(lhs, w, preferred_element_type=f32)

    def bn_affine(y, g, b):
        # single-pass training-mode BN; stats from the f32 accumulator output
        s = jnp.sum(y, axis=0, keepdims=True)         # (1, WC)
        ss = jnp.sum(y * y, axis=0, keepdims=True)    # (1, WC)
        st = jnp.concatenate([s, ss], axis=0)         # (2, WC)
        # lane-roll reduction tree: circular fold of the W replicas at stride C
        # -> per-channel sums, already replicated back across the W lane groups
        shift = C
        for _ in range(W.bit_length() - 1):           # log2(W) steps
            st = st + pltpu.roll(st, shift=shift, axis=1)
            shift *= 2
        mu = st[0:1, :] * inv_count
        var = st[1:2, :] * inv_count - mu * mu        # biased batch variance
        scale = g * jax.lax.rsqrt(var + EPS)
        return scale, b - mu * scale

    w1 = wb_ref[0]
    w2 = wb_ref[1]
    g1 = gb_ref[0:1, :].astype(f32)
    b1 = gb_ref[1:2, :].astype(f32)
    g2 = gb_ref[2:3, :].astype(f32)
    b2 = gb_ref[3:4, :].astype(f32)

    # ---- stage 1: conv1 -> bn1 -> relu -------------------------------------
    y1 = conv3x3(x, w1)
    sc1, sh1 = bn_affine(y1, g1, b1)
    h1 = jnp.maximum(y1 * sc1 + sh1, 0.0)

    # ---- stage 2: conv2 -> bn2 -> +residual -> relu ------------------------
    y2 = conv3x3(h1, w2)
    sc2, sh2 = bn_affine(y2, g2, b2)
    out_ref[...] = jnp.maximum(y2 * sc2 + sh2 + x, 0.0).astype(out_ref.dtype)


# ----------------------------------------------------------------------------
# one-time parameter preprocessing (NOT on the per-call hot path)
# ----------------------------------------------------------------------------
def _banded_weight(w_hwio, W, C):
    """(3,3,Cin,Cout) HWIO -> (3*W*C, W*C) fused banded weight.

    The dy=-1/0/+1 bands are stacked along K (matching the [up|z|dn] LHS
    concat); the dx shift and width-boundary zeros are baked in.
    """
    sel = np.zeros((3, W, W), np.float32)   # sel[dx_idx, x_in, x_out]
    for e in range(3):                      # dx = e - 1
        for xo in range(W):
            xi = xo + e - 1
            if 0 <= xi < W:
                sel[e, xi, xo] = 1.0
    wb = jnp.einsum("deio,exy->dxiyo", w_hwio.astype(jnp.float32),
                    jnp.asarray(sel))
    return wb.reshape(3 * W * C, W * C)


def prepare_resblock_params(w1_hwio, g1, b1, w2_hwio, g2, b2, *, W,
                            mxu_dtype=jnp.float32):
    """Pack weights/BN params into the 2 kernel inputs. Run once per weight set."""
    C = w1_hwio.shape[2]
    assert W & (W - 1) == 0, "W must be a power of two (BN roll-fold tree)"
    wb = jnp.stack([_banded_weight(w1_hwio, W, C),
                    _banded_weight(w2_hwio, W, C)], axis=0).astype(mxu_dtype)
    gb = jnp.stack([jnp.tile(g1, W), jnp.tile(b1, W),
                    jnp.tile(g2, W), jnp.tile(b2, W)], axis=0).astype(jnp.float32)
    return wb, gb   # (2, 3*W*C, W*C), (4, W*C)


# ----------------------------------------------------------------------------
# hot path
# ----------------------------------------------------------------------------
@functools.partial(jax.jit, static_argnames=("H", "W", "C"))
def _resblock_folded(x_fold, wb, gb, *, H, W, C):
    NH, WC = x_fold.shape
    kernel = functools.partial(resblock_kernel, H=H, W=W, C=C,
                               inv_count=1.0 / float(NH * W))
    return pl.pallas_call(
        kernel,
        out_shape=jax.ShapeDtypeStruct((NH, WC), x_fold.dtype),
        grid=(1,),
        in_specs=[
            pl.BlockSpec((NH, WC), lambda i: (0, 0)),            # x (folded)
            pl.BlockSpec((2, 3 * WC, WC), lambda i: (0, 0, 0)),  # packed conv w
            pl.BlockSpec((4, WC), lambda i: (0, 0)),             # packed g/b
        ],
        out_specs=pl.BlockSpec((NH, WC), lambda i: (0, 0)),
        compiler_params=pltpu.CompilerParams(
            dimension_semantics=("arbitrary",)),
    )(x_fold, wb, gb)


def resblock_nhwc(x_nhwc, wb, gb):
    """Preferred entry point: NHWC in / NHWC out (fold/unfold are free reshapes)."""
    N, H, W, C = x_nhwc.shape
    out = _resblock_folded(x_nhwc.reshape(N * H, W * C), wb, gb, H=H, W=W, C=C)
    return out.reshape(N, H, W, C)


def resblock_pallas_nchw(x_nchw, w1_hwio, g1, b1, w2_hwio, g2, b2,
                         mxu_dtype=jnp.float32):
    """Convenience wrapper matching the torch module's NCHW layout."""
    N, C, H, W = x_nchw.shape
    wb, gb = prepare_resblock_params(w1_hwio, g1, b1, w2_hwio, g2, b2, W=W,
                                     mxu_dtype=mxu_dtype)
    x_nhwc = jnp.transpose(x_nchw, (0, 2, 3, 1))
    return jnp.transpose(resblock_nhwc(x_nhwc, wb, gb), (0, 3, 1, 2))


# ----------------------------------------------------------------------------
# pure-JAX reference (torch ResBlock semantics, training-mode BN)
# ----------------------------------------------------------------------------
def resblock_ref(x_nchw, w1_hwio, g1, b1, w2_hwio, g2, b2):
    x = jnp.transpose(x_nchw, (0, 2, 3, 1))

    def conv(y, w):
        return jax.lax.conv_general_dilated(
            y, w, window_strides=(1, 1), padding="SAME",
            dimension_numbers=("NHWC", "HWIO", "NHWC"))

    def bn(y, g, b):
        mu = jnp.mean(y, axis=(0, 1, 2), keepdims=True)
        var = jnp.mean((y - mu) ** 2, axis=(0, 1, 2), keepdims=True)
        return (y - mu) * jax.lax.rsqrt(var + EPS) * g + b

    h = jax.nn.relu(bn(conv(x, w1_hwio), g1, b1))
    h = bn(conv(h, w2_hwio), g2, b2) + x
    return jnp.transpose(jax.nn.relu(h), (0, 3, 1, 2))


if __name__ == "__main__":
    # shapes consistent with ResBlock(planes=8): x is NCHW (2, 8, 16, 16)
    N, C, H, W = 2, 8, 16, 16
    key = jax.random.PRNGKey(0)
    kx, kw1, kw2, kg1, kb1, kg2, kb2 = jax.random.split(key, 7)

    x = jax.random.normal(kx, (N, C, H, W), jnp.float32)
    fan = 1.0 / np.sqrt(9 * C)
    w1 = jax.random.normal(kw1, (3, 3, C, C), jnp.float32) * fan  # HWIO
    w2 = jax.random.normal(kw2, (3, 3, C, C), jnp.float32) * fan  # HWIO
    g1 = 1.0 + 0.1 * jax.random.normal(kg1, (C,), jnp.float32)
    b1 = 0.1 * jax.random.normal(kb1, (C,), jnp.float32)
    g2 = 1.0 + 0.1 * jax.random.normal(kg2, (C,), jnp.float32)
    b2 = 0.1 * jax.random.normal(kb2, (C,), jnp.float32)

    ref = jax.block_until_ready(resblock_ref(x, w1, g1, b1, w2, g2, b2))

    # --- f32 MXU operands: exact check against the torch-semantics reference
    x_nhwc = jnp.transpose(x, (0, 2, 3, 1))
    wb_f32, gb = prepare_resblock_params(w1, g1, b1, w2, g2, b2, W=W,
                                         mxu_dtype=jnp.float32)
    out_f32 = jax.block_until_ready(resblock_nhwc(x_nhwc, wb_f32, gb))
    np.testing.assert_allclose(
        np.asarray(jnp.transpose(out_f32, (0, 3, 1, 2))), np.asarray(ref),
        rtol=1e-3, atol=1e-3)

    # --- bf16 MXU operands (v5e/v6e recommendation): f32 accumulation & BN,
    #     so only the conv-operand rounding (~2^-9 rel) shows up in the output.
    wb_bf16, _ = prepare_resblock_params(w1, g1, b1, w2, g2, b2, W=W,
                                         mxu_dtype=jnp.bfloat16)
    out_bf16 = jax.block_until_ready(resblock_nhwc(x_nhwc, wb_bf16, gb))
    np.testing.assert_allclose(
        np.asarray(jnp.transpose(out_bf16, (0, 3, 1, 2))), np.asarray(ref),
        rtol=3e-2, atol=3e-2)

    print("KERNEL_OK")
</pallas_src>

<mosaic_0001>
module attributes {stable_mosaic.version = 11 : i64} {
  func.func @resblock_kernel(%arg0: i32, %arg1: memref<32x128xf32, #tpu.memory_space<vmem>>, %arg2: memref<2x384x128xf32, #tpu.memory_space<vmem>>, %arg3: memref<4x128xf32, #tpu.memory_space<vmem>>, %arg4: memref<32x128xf32, #tpu.memory_space<vmem>>) attributes {dimension_semantics = [#tpu.dimension_semantics<arbitrary>], iteration_bounds = array<i64: 1>, scalar_prefetch = 0 : i64, scratch_operands = 0 : i64, tpu.core_type = #tpu.core_type<tc>, window_params = [{pipeline_mode = #tpu.pipeline_mode<synchronous>, transform_indices = @transform_0, window_bounds = array<i64: 32, 128>}, {pipeline_mode = #tpu.pipeline_mode<synchronous>, transform_indices = @transform_1, window_bounds = array<i64: 2, 384, 128>}, {pipeline_mode = #tpu.pipeline_mode<synchronous>, transform_indices = @transform_2, window_bounds = array<i64: 4, 128>}, {pipeline_mode = #tpu.pipeline_mode<synchronous>, transform_indices = @transform_3, window_bounds = array<i64: 32, 128>}]} {
    %c0 = arith.constant 0 : index
    %c0_0 = arith.constant 0 : index
    %0 = vector.load %arg1[%c0, %c0_0] : memref<32x128xf32, #tpu.memory_space<vmem>>, vector<32x128xf32>
    %1 = tpu.iota {dimensions = array<i32: 0>} : vector<32x128xi32>
    %c16_i32 = arith.constant 16 : i32
    %c0_i32 = arith.constant 0 : i32
    %2 = arith.cmpi eq, %c16_i32, %c0_i32 : i32
    %c1_i32 = arith.constant 1 : i32
    %3 = arith.select %2, %c1_i32, %c16_i32 : i32
    %4 = vector.broadcast %3 : i32 to vector<32x128xi32>
    %5 = arith.remsi %1, %4 : vector<32x128xi32>
    %c0_i32_1 = arith.constant 0 : i32
    %6 = vector.broadcast %c0_i32_1 : i32 to vector<32x128xi32>
    %7 = arith.cmpi ne, %5, %6 : vector<32x128xi32>
    %c0_i32_2 = arith.constant 0 : i32
    %8 = vector.broadcast %c0_i32_2 : i32 to vector<32x128xi32>
    %9 = arith.cmpi slt, %5, %8 : vector<32x128xi32>
    %c0_i32_3 = arith.constant 0 : i32
    %10 = arith.cmpi slt, %3, %c0_i32_3 : i32
    %11 = vector.broadcast %10 : i1 to vector<32x128xi1>
    %12 = vector.broadcast %11 : vector<32x128xi1> to vector<32x128xi1>
    %13 = arith.xori %9, %12 : vector<32x128xi1>
    %14 = arith.andi %13, %7 : vector<32x128xi1>
    %15 = vector.broadcast %3 : i32 to vector<32x128xi32>
    %16 = arith.addi %5, %15 : vector<32x128xi32>
    %17 = arith.select %14, %16, %5 : vector<32x128xi1>, vector<32x128xi32>
    %c0_i32_4 = arith.constant 0 : i32
    %18 = vector.broadcast %c0_i32_4 : i32 to vector<32x128xi32>
    %19 = arith.cmpi ne, %17, %18 : vector<32x128xi32>
    %c15_i32 = arith.constant 15 : i32
    %20 = vector.broadcast %c15_i32 : i32 to vector<32x128xi32>
    %21 = arith.cmpi ne, %17, %20 : vector<32x128xi32>
    %c0_5 = arith.constant 0 : index
    %c0_6 = arith.constant 0 : index
    %c0_7 = arith.constant 0 : index
    %22 = vector.load %arg2[%c0_5, %c0_6, %c0_7] : memref<2x384x128xf32, #tpu.memory_space<vmem>>, vector<1x384x128xf32>
    %23 = vector.shape_cast %22 : vector<1x384x128xf32> to vector<384x128xf32>
    %c1 = arith.constant 1 : index
    %c0_8 = arith.constant 0 : index
    %c0_9 = arith.constant 0 : index
    %24 = vector.load %arg2[%c1, %c0_8, %c0_9] : memref<2x384x128xf32, #tpu.memory_space<vmem>>, vector<1x384x128xf32>
    %25 = vector.shape_cast %24 : vector<1x384x128xf32> to vector<384x128xf32>
    %c0_10 = arith.constant 0 : index
    %c0_11 = arith.constant 0 : index
    %26 = vector.load %arg3[%c0_10, %c0_11] : memref<4x128xf32, #tpu.memory_space<vmem>>, vector<1x128xf32>
    %c1_12 = arith.constant 1 : index
    %c0_13 = arith.constant 0 : index
    %27 = vector.load %arg3[%c1_12, %c0_13] : memref<4x128xf32, #tpu.memory_space<vmem>>, vector<1x128xf32>
    %c2 = arith.constant 2 : index
    %c0_14 = arith.constant 0 : index
    %28 = vector.load %arg3[%c2, %c0_14] : memref<4x128xf32, #tpu.memory_space<vmem>>, vector<1x128xf32>
    %c3 = arith.constant 3 : index
    %c0_15 = arith.constant 0 : index
    %29 = vector.load %arg3[%c3, %c0_15] : memref<4x128xf32, #tpu.memory_space<vmem>>, vector<1x128xf32>
    %c1_i32_16 = arith.constant 1 : i32
    %30 = tpu.dynamic_rotate %0 by %c1_i32_16 dim 0 : vector<32x128xf32>, i32 -> vector<32x128xf32>
    %cst = arith.constant 0.000000e+00 : f32
    %31 = vector.broadcast %cst : f32 to vector<32x128xf32>
    %32 = arith.select %19, %30, %31 : vector<32x128xi1>, vector<32x128xf32>
    %c31_i32 = arith.constant 31 : i32
    %33 = tpu.dynamic_rotate %0 by %c31_i32 dim 0 : vector<32x128xf32>, i32 -> vector<32x128xf32>
    %cst_17 = arith.constant 0.000000e+00 : f32
    %34 = vector.broadcast %cst_17 : f32 to vector<32x128xf32>
    %35 = arith.select %21, %33, %34 : vector<32x128xi1>, vector<32x128xf32>
    %36 = tpu.concatenate %32, %0, %35 in 1 : vector<32x128xf32>, vector<32x128xf32>, vector<32x128xf32> -> vector<32x384xf32>
    %cst_18 = arith.constant dense<0.000000e+00> : vector<32x128xf32>
    %37 = tpu.matmul %36, %23, %cst_18 {dimension_numbers = #tpu.dot_dimension_numbers<[1], [0], [0], [1], [0, 0, 1, 1], [], []>} : vector<32x384xf32>, vector<384x128xf32>, vector<32x128xf32> -> vector<32x128xf32>
    %cst_19 = arith.constant dense<0.000000e+00> : vector<128xf32>
    %38 = vector.multi_reduction <add>, %37, %cst_19 [0] : vector<32x128xf32> to vector<128xf32>
    %39 = vector.shape_cast %38 : vector<128xf32> to vector<1x128xf32>
    %40 = arith.mulf %37, %37 : vector<32x128xf32>
    %cst_20 = arith.constant dense<0.000000e+00> : vector<128xf32>
    %41 = vector.multi_reduction <add>, %40, %cst_20 [0] : vector<32x128xf32> to vector<128xf32>
    %42 = vector.shape_cast %41 : vector<128xf32> to vector<1x128xf32>
    %43 = tpu.concatenate %39, %42 in 0 : vector<1x128xf32>, vector<1x128xf32> -> vector<2x128xf32>
    %c8_i32 = arith.constant 8 : i32
    %44 = tpu.dynamic_rotate %43 by %c8_i32 dim 1 : vector<2x128xf32>, i32 -> vector<2x128xf32>
    %45 = arith.addf %43, %44 : vector<2x128xf32>
    %c16_i32_21 = arith.constant 16 : i32
    %46 = tpu.dynamic_rotate %45 by %c16_i32_21 dim 1 : vector<2x128xf32>, i32 -> vector<2x128xf32>
    %47 = arith.addf %45, %46 : vector<2x128xf32>
    %c32_i32 = arith.constant 32 : i32
    %48 = tpu.dynamic_rotate %47 by %c32_i32 dim 1 : vector<2x128xf32>, i32 -> vector<2x128xf32>
    %49 = arith.addf %47, %48 : vector<2x128xf32>
    %c64_i32 = arith.constant 64 : i32
    %50 = tpu.dynamic_rotate %49 by %c64_i32 dim 1 : vector<2x128xf32>, i32 -> vector<2x128xf32>
    %51 = arith.addf %49, %50 : vector<2x128xf32>
    %52 = vector.extract_strided_slice %51 {offsets = [0, 0], sizes = [1, 128], strides = [1, 1]} : vector<2x128xf32> to vector<1x128xf32>
    %cst_22 = arith.constant 0.001953125 : f32
    %53 = vector.broadcast %cst_22 : f32 to vector<1x128xf32>
    %54 = arith.mulf %52, %53 : vector<1x128xf32>
    %55 = vector.extract_strided_slice %51 {offsets = [1, 0], sizes = [1, 128], strides = [1, 1]} : vector<2x128xf32> to vector<1x128xf32>
    %cst_23 = arith.constant 0.001953125 : f32
    %56 = vector.broadcast %cst_23 : f32 to vector<1x128xf32>
    %57 = arith.mulf %55, %56 : vector<1x128xf32>
    %58 = arith.mulf %54, %54 : vector<1x128xf32>
    %59 = arith.subf %57, %58 : vector<1x128xf32>
    %cst_24 = arith.constant 9.99999974E-6 : f32
    %60 = vector.broadcast %cst_24 : f32 to vector<1x128xf32>
    %61 = arith.addf %59, %60 : vector<1x128xf32>
    %62 = math.rsqrt %61 : vector<1x128xf32>
    %63 = arith.mulf %26, %62 : vector<1x128xf32>
    %64 = arith.mulf %54, %63 : vector<1x128xf32>
    %65 = arith.subf %27, %64 : vector<1x128xf32>
    %66 = vector.broadcast %63 : vector<1x128xf32> to vector<32x128xf32>
    %67 = arith.mulf %37, %66 : vector<32x128xf32>
    %68 = vector.broadcast %65 : vector<1x128xf32> to vector<32x128xf32>
    %69 = arith.addf %67, %68 : vector<32x128xf32>
    %cst_25 = arith.constant 0.000000e+00 : f32
    %70 = vector.broadcast %cst_25 : f32 to vector<32x128xf32>
    %71 = arith.maximumf %69, %70 : vector<32x128xf32>
    %c1_i32_26 = arith.constant 1 : i32
    %72 = tpu.dynamic_rotate %71 by %c1_i32_26 dim 0 : vector<32x128xf32>, i32 -> vector<32x128xf32>
    %cst_27 = arith.constant 0.000000e+00 : f32
    %73 = vector.broadcast %cst_27 : f32 to vector<32x128xf32>
    %74 = arith.select %19, %72, %73 : vector<32x128xi1>, vector<32x128xf32>
    %c31_i32_28 = arith.constant 31 : i32
    %75 = tpu.dynamic_rotate %71 by %c31_i32_28 dim 0 : vector<32x128xf32>, i32 -> vector<32x128xf32>
    %cst_29 = arith.constant 0.000000e+00 : f32
    %76 = vector.broadcast %cst_29 : f32 to vector<32x128xf32>
    %77 = arith.select %21, %75, %76 : vector<32x128xi1>, vector<32x128xf32>
    %78 = tpu.concatenate %74, %71, %77 in 1 : vector<32x128xf32>, vector<32x128xf32>, vector<32x128xf32> -> vector<32x384xf32>
    %cst_30 = arith.constant dense<0.000000e+00> : vector<32x128xf32>
    %79 = tpu.matmul %78, %25, %cst_30 {dimension_numbers = #tpu.dot_dimension_numbers<[1], [0], [0], [1], [0, 0, 1, 1], [], []>} : vector<32x384xf32>, vector<384x128xf32>, vector<32x128xf32> -> vector<32x128xf32>
    %cst_31 = arith.constant dense<0.000000e+00> : vector<128xf32>
    %80 = vector.multi_reduction <add>, %79, %cst_31 [0] : vector<32x128xf32> to vector<128xf32>
    %81 = vector.shape_cast %80 : vector<128xf32> to vector<1x128xf32>
    %82 = arith.mulf %79, %79 : vector<32x128xf32>
    %cst_32 = arith.constant dense<0.000000e+00> : vector<128xf32>
    %83 = vector.multi_reduction <add>, %82, %cst_32 [0] : vector<32x128xf32> to vector<128xf32>
    %84 = vector.shape_cast %83 : vector<128xf32> to vector<1x128xf32>
    %85 = tpu.concatenate %81, %84 in 0 : vector<1x128xf32>, vector<1x128xf32> -> vector<2x128xf32>
    %c8_i32_33 = arith.constant 8 : i32
    %86 = tpu.dynamic_rotate %85 by %c8_i32_33 dim 1 : vector<2x128xf32>, i32 -> vector<2x128xf32>
    %87 = arith.addf %85, %86 : vector<2x128xf32>
    %c16_i32_34 = arith.constant 16 : i32
    %88 = tpu.dynamic_rotate %87 by %c16_i32_34 dim 1 : vector<2x128xf32>, i32 -> vector<2x128xf32>
    %89 = arith.addf %87, %88 : vector<2x128xf32>
    %c32_i32_35 = arith.constant 32 : i32
    %90 = tpu.dynamic_rotate %89 by %c32_i32_35 dim 1 : vector<2x128xf32>, i32 -> vector<2x128xf32>
    %91 = arith.addf %89, %90 : vector<2x128xf32>
    %c64_i32_36 = arith.constant 64 : i32
    %92 = tpu.dynamic_rotate %91 by %c64_i32_36 dim 1 : vector<2x128xf32>, i32 -> vector<2x128xf32>
    %93 = arith.addf %91, %92 : vector<2x128xf32>
    %94 = vector.extract_strided_slice %93 {offsets = [0, 0], sizes = [1, 128], strides = [1, 1]} : vector<2x128xf32> to vector<1x128xf32>
    %cst_37 = arith.constant 0.001953125 : f32
    %95 = vector.broadcast %cst_37 : f32 to vector<1x128xf32>
    %96 = arith.mulf %94, %95 : vector<1x128xf32>
    %97 = vector.extract_strided_slice %93 {offsets = [1, 0], sizes = [1, 128], strides = [1, 1]} : vector<2x128xf32> to vector<1x128xf32>
    %cst_38 = arith.constant 0.001953125 : f32
    %98 = vector.broadcast %cst_38 : f32 to vector<1x128xf32>
    %99 = arith.mulf %97, %98 : vector<1x128xf32>
    %100 = arith.mulf %96, %96 : vector<1x128xf32>
    %101 = arith.subf %99, %100 : vector<1x128xf32>
    %cst_39 = arith.constant 9.99999974E-6 : f32
    %102 = vector.broadcast %cst_39 : f32 to vector<1x128xf32>
    %103 = arith.addf %101, %102 : vector<1x128xf32>
    %104 = math.rsqrt %103 : vector<1x128xf32>
    %105 = arith.mulf %28, %104 : vector<1x128xf32>
    %106 = arith.mulf %96, %105 : vector<1x128xf32>
    %107 = arith.subf %29, %106 : vector<1x128xf32>
    %108 = vector.broadcast %105 : vector<1x128xf32> to vector<32x128xf32>
    %109 = arith.mulf %79, %108 : vector<32x128xf32>
    %110 = vector.broadcast %107 : vector<1x128xf32> to vector<32x128xf32>
    %111 = arith.addf %109, %110 : vector<32x128xf32>
    %112 = arith.addf %111, %0 : vector<32x128xf32>
    %cst_40 = arith.constant 0.000000e+00 : f32
    %113 = vector.broadcast %cst_40 : f32 to vector<32x128xf32>
    %114 = arith.maximumf %112, %113 : vector<32x128xf32>
    %c0_41 = arith.constant 0 : index
    %c0_42 = arith.constant 0 : index
    %115 = vector.load %arg4[%c0_41, %c0_42] : memref<32x128xf32, #tpu.memory_space<vmem>>, vector<32x128xf32>
    tpu.vector_store %arg4[%c0_41, %c0_42], %114 {strides = array<i32>} : memref<32x128xf32, #tpu.memory_space<vmem>>, vector<32x128xf32>,
    return
  }
  func.func @transform_0(%arg0: i32) -> (i32, i32) {
    %c0_i32 = arith.constant 0 : i32
    %c0_i32_0 = arith.constant 0 : i32
    %c0_i32_1 = arith.constant 0 : i32
    return %c0_i32, %c0_i32_0 : i32, i32
  }
  func.func @transform_1(%arg0: i32) -> (i32, i32, i32) {
    %c0_i32 = arith.constant 0 : i32
    %c0_i32_0 = arith.constant 0 : i32
    %c0_i32_1 = arith.constant 0 : i32
    %c0_i32_2 = arith.constant 0 : i32
    return %c0_i32, %c0_i32_0, %c0_i32_1 : i32, i32, i32
  }
  func.func @transform_2(%arg0: i32) -> (i32, i32) {
    %c0_i32 = arith.constant 0 : i32
    %c0_i32_0 = arith.constant 0 : i32
    %c0_i32_1 = arith.constant 0 : i32
    return %c0_i32, %c0_i32_0 : i32, i32
  }
  func.func @transform_3(%arg0: i32) -> (i32, i32) {
    %c0_i32 = arith.constant 0 : i32
    %c0_i32_0 = arith.constant 0 : i32
    %c0_i32_1 = arith.constant 0 : i32
    return %c0_i32, %c0_i32_0 : i32, i32
  }
}

</mosaic_0001>

<bundles_post_ra>
// kernel: _resblock_folded.1
= control target key start
LH: loop header
LB: loop body
LE: loop exit
PB: predicated region body
PF: predicated region fallthrough
CT: control target
= control target key end

     0   :  { %8 = vsyncpa [#allocation3], 0  ;;  %s1030_s0 = inlined_call_operand.hbm [shape: f32[32,128], index: 0, kind: input, shape index: {}]   ;;  %s1031_s1 = inlined_call_operand.hbm [shape: f32[2,384,128], index: 1, kind: input, shape index: {}]   ;;  %s1032_s2 = inlined_call_operand.hbm [shape: f32[4,128], index: 2, kind: input, shape index: {}]   ;;  %s1033_s3 = inlined_call_operand.hbm [shape: f32[32,128], index: 3, kind: output, shape index: {}]  }
   0x1   :  { %9 = vsyncpa [#allocation6], 0 }
   0x2   :  { %10 = vsyncpa [#allocation4], 0  ;;  %s28_s14 = sshll.u32 %s1031_s1, 4  ;;  %s778_s15 = smov [#allocation5]   ;;  %s29_s14 = int_to_ptr.hbm [resolvable:$true] %s28_s14 }
   0x3   :  { %s30_s16 = sshll.u32 %s778_s15, 4  ;;  %s15_s19 = sshll.u32 %s1030_s0, 4  ;;  %s31_s16 = int_to_ptr.vmem [resolvable:$true] %s30_s16  ;;  %s16_s19 = int_to_ptr.hbm [resolvable:$true] %s15_s19 }
   0x4   :  { %s779_s20 = smov 128   ;;  %s780_s21 = smov 8  }
   0x5   :  { %36 = dma.hbm_to_vmem [thread:$0]  %s29_s14, 12288, %s31_s16, [#allocation6], %s779_s20, %s779_s20, %s780_s21  }
   0x6   :  { %s781_s22 = smov [#allocation2]   ;;  %s42_s1 = sshll.u32 %s1032_s2, 4  ;;  %s43_s1 = int_to_ptr.hbm [resolvable:$true] %s42_s1 }
   0x7   :  { %s17_s23 = sshll.u32 %s781_s22, 4  ;;  %s782_s0 = smov [#allocation7]   ;;  %s18_s23 = int_to_ptr.vmem [resolvable:$true] %s17_s23 }
   0x8   :  { %23 = dma.hbm_to_vmem [thread:$0]  %s16_s19, 512, %s18_s23, [#allocation3], %s779_s20, %s779_s20, %s780_s21  }
   0x9   :  { %s44_s26 = sshll.u32 %s782_s0, 4  ;;  %s45_s26 = int_to_ptr.vmem [resolvable:$true] %s44_s26 }
   0xa   :  { %47 = dma.hbm_to_vmem [thread:$0]  %s43_s1, 64, %s45_s26, [#allocation6]  }
   0xb   :  { %772 = dma.done.wait [#allocation3], 512  }
   0xc   :  { %773 = vsyncadd [#allocation3], 4294966784 }
   0xd   :  { %774 = dma.done.wait [#allocation6], 12352  }
   0xe   :  { %775 = vsyncadd [#allocation6], 4294954944  ;;  %v172_v0 = vld [vmem:[#allocation5 + $0x178] sm:$0xff]  ;;  %v171_v1 = vld [vmem:[#allocation5 + $0x170] sm:$0xff]  ;;  %v64_v32 = vlaneseq  ;;  %vm361_vm6 = vcmask 1040384   ;;  %s783_s2 = smov 16  }
   0xf   :  { %v140_v2 = vld [vmem:[#allocation5 + $0x78] sm:$0xff]  ;;  %310 = vmatpush.msra.mxu2 %v172_v0  ;;  %v139_v4 = vld [vmem:[#allocation5 + $0x70] sm:$0xff]  ;;  %v170_v5 = vld [vmem:[#allocation5 + $0x168] sm:$0xff]  ;;  %s784_s27 = smov 32   ;;  %s785_s28 = smov 64  }
  0x10   :  { %252 = vmatpush.msra.mxu0 %v140_v2  ;;  %v156_v3 = vld [vmem:[#allocation5 + $0xf8] sm:$0xff]  ;;  %v155_v6 = vld [vmem:[#allocation5 + $0xf0] sm:$0xff]  ;;  %v138_v7 = vld [vmem:[#allocation5 + $0x68] sm:$0xff]  ;;  %v826_v41 = vshrl.u32 %v64_v32, 7  ;;  %s786_s29 = smov [#allocation8]   ;;  %s609_s6 = sshll.u32 %s1033_s3, 4  ;;  %s610_s6 = int_to_ptr.hbm [resolvable:$true] %s609_s6 }
  0x11   :  { %281 = vmatpush.msra.mxu1 %v156_v3  ;;  %311 = vmatpush.msra.mxu2 %v171_v1  ;;  %v154_v8 = vld [vmem:[#allocation5 + $0xe8] sm:$0xff]  ;;  %v169_v9 = vld [vmem:[#allocation5 + $0x160] sm:$0xff]  ;;  %v168_v12 = vld [vmem:[#allocation5 + $0x158] sm:$0xff]  ;;  %s607_s30 = sshll.u32 %s786_s29, 4  ;;  %s608_s30 = int_to_ptr.vmem [resolvable:$true] %s607_s30 }
  0x12   :  { %253 = vmatpush.msra.mxu0 %v139_v4  ;;  %v137_v10 = vld [vmem:[#allocation5 + $0x60] sm:$0xff]  ;;  %v136_v13 = vld [vmem:[#allocation5 + $0x58] sm:$0xff]  ;;  %v167_v15 = vld [vmem:[#allocation5 + $0x150] sm:$0xff]  ;;  %vm243_vm0 = vcmp.lt.s32.totalorder %v826_v41, 7  ;;  %v73_v51 = vand.u32 15, %v826_v41  ;;  %vm230_vm1 = vcmp.lt.s32.totalorder %v826_v41, 1 }
  0x13   :  { %282 = vmatpush.msra.mxu1 %v155_v6  ;;  %312 = vmatpush.msra.mxu2 %v170_v5  ;;  %v153_v11 = vld [vmem:[#allocation5 + $0xe0] sm:$0xff]  ;;  %v152_v14 = vld [vmem:[#allocation5 + $0xd8] sm:$0xff]  ;;  %v135_v16 = vld [vmem:[#allocation5 + $0x50] sm:$0xff]  ;;  %v66_v59 = vadd.s32 8, %v826_v41  ;;  %v67_v5 = vadd.s32 16, %v826_v41 }
  0x14   :  { %254 = vmatpush.msra.mxu0 %v138_v7  ;;  %v151_v17 = vld [vmem:[#allocation5 + $0xd0] sm:$0xff]  ;;  %v166_v18 = vld [vmem:[#allocation5 + $0x148] sm:$0xff]  ;;  %v165_v21 = vld [vmem:[#allocation5 + $0x140] sm:$0xff]  ;;  %vm840_vm2 = vcmp.ne.s32.totalorder %v73_v51, 0 }
  0x15   :  { %283 = vmatpush.msra.mxu1 %v154_v8  ;;  %313 = vmatpush.msra.mxu2 %v169_v9  ;;  %v134_v19 = vld [vmem:[#allocation5 + $0x48] sm:$0xff]  ;;  %v133_v22 = vld [vmem:[#allocation5 + $0x40] sm:$0xff]  ;;  %v164_v24 = vld [vmem:[#allocation5 + $0x138] sm:$0xff]  ;;  %v80_v63 = vand.u32 15, %v66_v59  ;;  %v87_v7 = vand.u32 15, %v67_v5 }
  0x16   :  { %255 = vmatpush.msra.mxu0 %v137_v10  ;;  %v150_v20 = vld [vmem:[#allocation5 + $0xc8] sm:$0xff]  ;;  %v149_v23 = vld [vmem:[#allocation5 + $0xc0] sm:$0xff]  ;;  %v132_v25 = vld [vmem:[#allocation5 + $0x38] sm:$0xff]  ;;  %v68_v10 = vadd.s32 24, %v826_v41 }
  0x17   :  { %284 = vmatpush.msra.mxu1 %v153_v11  ;;  %314 = vmatpush.msra.mxu2 %v168_v12  ;;  %v148_v26 = vld [vmem:[#allocation5 + $0xb8] sm:$0xff]  ;;  %v163_v27 = vld [vmem:[#allocation5 + $0x130] sm:$0xff]  ;;  %v162_v30 = vld [vmem:[#allocation5 + $0x128] sm:$0xff]  ;;  %vm853_vm3 = vcmp.ne.s32.totalorder %v80_v63, 15  ;;  %vm870_vm4 = vcmp.ne.s32.totalorder %v87_v7, 0 }
  0x18   :  { %256 = vmatpush.msra.mxu0 %v136_v13  ;;  %v131_v28 = vld [vmem:[#allocation5 + $0x30] sm:$0xff]  ;;  %v130_v31 = vld [vmem:[#allocation5 + $0x28] sm:$0xff]  ;;  %v161_v34 = vld [vmem:[#allocation5 + $0x120] sm:$0xff]  ;;  %v94_v13 = vand.u32 15, %v68_v10 }
  0x19   :  { %285 = vmatpush.msra.mxu1 %v152_v14  ;;  %315 = vmatpush.msra.mxu2 %v167_v15  ;;  %v147_v29 = vld [vmem:[#allocation5 + $0xb0] sm:$0xff]  ;;  %v146_v33 = vld [vmem:[#allocation5 + $0xa8] sm:$0xff]  ;;  %v129_v35 = vld [vmem:[#allocation5 + $0x20] sm:$0xff] }
  0x1a   :  { %257 = vmatpush.msra.mxu0 %v135_v16  ;;  %v160_v36 = vld [vmem:[#allocation5 + $0x118] sm:$0xff]  ;;  %v145_v37 = vld [vmem:[#allocation5 + $0xa0] sm:$0xff]  ;;  %v824_v40 = vld [vmem:[#allocation2 + $0x8] sm:$0xff]  ;;  %vm879_vm5 = vcmp.ne.s32.totalorder %v94_v13, 15 }
  0x1b   :  { %286 = vmatpush.msra.mxu1 %v151_v17  ;;  %316 = vmatpush.msra.mxu2 %v166_v18  ;;  %v128_v38 = vld [vmem:[#allocation5 + $0x18] sm:$0xff]  ;;  %v822_v39 = vld [vmem:[#allocation2] sm:$0xff]  ;;  %v159_v44 = vld [vmem:[#allocation5 + $0x110] sm:$0xff]  ;;  %v240_v48 = vrot.slane %v824_v40, 1  ;;  %v227_v1 = vrot.slane %v824_v40, 7 }
  0x1c   :  { %258 = vmatpush.msra.mxu0 %v134_v19  ;;  %v144_v42 = vld [vmem:[#allocation5 + $0x98] sm:$0xff]  ;;  %v127_v45 = vld [vmem:[#allocation5 + $0x10] sm:$0xff]  ;;  %v239_v47 = vrot.slane %v822_v39, 1  ;;  %v158_v49 = vld [vmem:[#allocation5 + $0x108] sm:$0xff]  ;;  %v226_v52 = vrot.slane %v822_v39, 7 }
  0x1d   :  { %287 = vmatpush.msra.mxu1 %v150_v20  ;;  %317 = vmatpush.msra.mxu2 %v165_v21  ;;  %v828_v43 = vld [vmem:[#allocation2 + $0x18] sm:$0xff]  ;;  %v143_v46 = vld [vmem:[#allocation5 + $0x90] sm:$0xff]  ;;  %v126_v50 = vld [vmem:[#allocation5 + $0x8] sm:$0xff] }
  0x1e   :  { %259 = vmatpush.msra.mxu0 %v133_v22  ;;  %v229_v53 = vrot.slane %v828_v43, 7  ;;  %v142_v54 = vld [vmem:[#allocation5 + $0x88] sm:$0xff]  ;;  %v157_v55 = vld [vmem:[#allocation5 + $0x100] sm:$0xff]  ;;  %v246_v57 = vsel %vm243_vm0, %v239_v47, %v240_v48  ;;  %v846_v62 = vld [vmem:[#allocation2 + $0x10] sm:$0xff]  ;;  %v233_v4 = vsel %vm230_vm1, %v226_v52, %v227_v1  ;;  %v242_v6 = vrot.slane %v828_v43, 1 }
  0x1f   :  { %288 = vmatpush.msra.mxu1 %v149_v23  ;;  %318 = vmatpush.msra.mxu2 %v164_v24  ;;  %v125_v56 = vld [vmem:[#allocation5] sm:$0xff]  ;;  %v241_v0 = vrot.slane %v846_v62, 1  ;;  %v228_v8 = vrot.slane %v846_v62, 7  ;;  %v204_v10 = vld [vmem:[#allocation5 + $0x270] sm:$0xff]  ;;  %v918_v13 = vld [vmem:[#allocation5 + $0x2f8] sm:$0xff] }
  0x20   :  { %260 = vmatpush.msra.mxu0 %v132_v25  ;;  %v141_v58 = vld [vmem:[#allocation5 + $0x80] sm:$0xff]  ;;  %v234_v61 = vsel %vm230_vm1, %v229_v53, %v226_v52  ;;  %v247_v15 = vsel %vm243_vm0, %v242_v6, %v239_v47 }
  0x21   :  { %289 = vmatpush.msra.mxu1 %v148_v26  ;;  %319 = vmatpush.msra.mxu2 %v163_v27  ;;  %v245_v3 = vsel %vm243_vm0, %v240_v48, %v241_v0  ;;  %v244_v9 = vsel %vm243_vm0, %v241_v0, %v242_v6  ;;  %v232_v12 = vsel %vm230_vm1, %v227_v1, %v228_v8 }
  0x22   :  { %261 = vmatpush.msra.mxu0 %v131_v28  ;;  %v231_v16 = vsel %vm230_vm1, %v228_v8, %v229_v53 }
  0x23   :  { %290 = vmatpush.msra.mxu1 %v147_v29  ;;  %320 = vmatpush.msra.mxu2 %v162_v30 }
  0x24   :  { %262 = vmatpush.msra.mxu0 %v130_v31 }
  0x25   :  { %291 = vmatpush.msra.mxu1 %v146_v33  ;;  %321 = vmatpush.msra.mxu2 %v161_v34 }
  0x26   :  { %263 = vmatpush.msra.mxu0 %v129_v35 }
  0x27   :  { %292 = vmatpush.msra.mxu1 %v145_v37  ;;  %322 = vmatpush.msra.mxu2 %v160_v36 }
  0x28   :  { %264 = vmatpush.msra.mxu0 %v128_v38 }
  0x29   :  { %293 = vmatpush.msra.mxu1 %v144_v42  ;;  %323 = vmatpush.msra.mxu2 %v159_v44 }
  0x2a   :  { %265 = vmatpush.msra.mxu0 %v127_v45 }
  0x2b   :  { %294 = vmatpush.msra.mxu1 %v143_v46  ;;  %324 = vmatpush.msra.mxu2 %v158_v49 }
  0x2c   :  { %266 = vmatpush.msra.mxu0 %v126_v50 }
  0x2d   :  { %295 = vmatpush.msra.mxu1 %v142_v54  ;;  %325 = vmatpush.msra.mxu2 %v157_v55 }
  0x2e   :  { %267 = vmatpush.msra.mxu0 %v125_v56  ;;  %326 = vmatmul.f32.vlgmr.msra.gmra.mxu2 %v246_v57 }
  0x2f   :  { %296 = vmatpush.msra.mxu1 %v141_v58  ;;  %623 = vmatmul.msk.f32.vlgmr.msra.gmra.mxu0 %vm840_vm2, %v234_v61 }
  0x30   :  { %297 = vmatmul.f32.vlgmr.msra.gmra.mxu1 %v822_v39 }
  0x31   :  { %494 = vmatpush.msrb.mxu1 %v918_v13 }
  0x36   :  { %625 = vmatmul.msk.f32.gmra.mxu2 %vm853_vm3, %v245_v3 }
  0x37   :  { %271 = vmatmul.f32.gmra.mxu0 %v233_v4 }
  0x38   :  { %300 = vmatmul.f32.gmra.mxu1 %v824_v40 }
  0x3e   :  { %332 = vmatmul.f32.gmra.mxu2 %v244_v9  ;;  %v205_v9 = vld [vmem:[#allocation5 + $0x278] sm:$0xff] }
  0x3f   :  { %624 = vmatmul.msk.f32.gmra.mxu0 %vm870_vm4, %v232_v12  ;;  %631 = vmatpush.msrb.mxu2 %v205_v9  ;;  %v189_v12 = vld [vmem:[#allocation5 + $0x1f8] sm:$0xff] }
  0x40   :  { %303 = vmatmul.f32.gmra.mxu1 %v846_v62  ;;  %465 = vmatpush.msrb.mxu0 %v205_v9 }
  0x41   :  { %632 = vmatpush.msrb.mxu2 %v204_v10  ;;  %436 = vmatpush.msra.mxu3 %v189_v12  ;;  %v174_v12 = vld [vmem:[#allocation5 + $0x180] sm:$0xff] }
  0x42   :  { %466 = vmatpush.msrb.mxu0 %v204_v10  ;;  %v207_v10 = vld [vmem:[#allocation5 + $0x288] sm:$0xff] }
  0x46   :  { %626 = vmatmul.msk.f32.gmra.mxu2 %vm879_vm5, %v247_v15  ;;  %v203_v15 = vld [vmem:[#allocation5 + $0x268] sm:$0xff] }
  0x47   :  { %277 = vmatmul.f32.gmra.mxu0 %v231_v16  ;;  %633 = vmatpush.msrb.mxu2 %v203_v15  ;;  %v188_v16 = vld [vmem:[#allocation5 + $0x1f0] sm:$0xff] }
  0x48   :  { %306 = vmatmul.f32.gmra.mxu1 %v828_v43  ;;  %467 = vmatpush.msrb.mxu0 %v203_v15  ;;  %v206_v15 = vld [vmem:[#allocation5 + $0x280] sm:$0xff] }
  0x49   :  { %437 = vmatpush.msra.mxu3 %v188_v16 }
  0xac   :  { %v269_v17 = vpop.f32.mrf.mxu0 }
  0xad   :  { %v298_v18 = vpop.f32.mrf.mxu1 }
  0xae   :  { %v299_v26 = vadd.f32 %v298_v18, %v269_v17  ;;  %v921_v17 = vld [vmem:[#allocation5 + $0x2f0] sm:$0xff]  ;;  %v202_v18 = vld [vmem:[#allocation5 + $0x260] sm:$0xff] }
  0xaf   :  { %495 = vmatpush.msrb.mxu1 %v921_v17  ;;  %468 = vmatpush.msrb.mxu0 %v202_v18 }
  0xb0   :  { %634 = vmatpush.msrb.mxu2 %v202_v18 }
  0xb1   :  { %v327_v19 = vpop.f32.mrf.mxu2 }
  0xb2   :  { %v892_v30 = vadd.f32 %v327_v19, %v299_v26  ;;  %v187_v19 = vld [vmem:[#allocation5 + $0x1e8] sm:$0xff]  ;;  %v930_v26 = vld [vmem:[#allocation5 + $0x2d8] sm:$0xff] }
  0xb3   :  { %438 = vmatpush.msra.mxu3 %v187_v19 }
  0xb4   :  { %v272_v20 = vpop.f32.mrf.mxu0  ;;  %v348_v36 = vmul.f32 %v892_v30, %v892_v30 }
  0xb5   :  { %v301_v21 = vpop.f32.mrf.mxu1 }
  0xb6   :  { %v302_v25 = vadd.f32 %v301_v21, %v272_v20  ;;  %v924_v20 = vld [vmem:[#allocation5 + $0x2e8] sm:$0xff]  ;;  %v201_v21 = vld [vmem:[#allocation5 + $0x258] sm:$0xff] }
  0xb7   :  { %496 = vmatpush.msrb.mxu1 %v924_v20  ;;  %469 = vmatpush.msrb.mxu0 %v201_v21 }
  0xb8   :  { %635 = vmatpush.msrb.mxu2 %v201_v21 }
  0xb9   :  { %v330_v22 = vpop.f32.mrf.mxu2 }
  0xba   :  { %v890_v29 = vadd.f32 %v330_v22, %v302_v25  ;;  %v186_v22 = vld [vmem:[#allocation5 + $0x1e0] sm:$0xff]  ;;  %v185_v25 = vld [vmem:[#allocation5 + $0x1d8] sm:$0xff] }
  0xbb   :  { %439 = vmatpush.msra.mxu3 %v186_v22 }
  0xbc   :  { %v275_v23 = vpop.f32.mrf.mxu0  ;;  %v349_v34 = vmul.f32 %v890_v29, %v890_v29  ;;  %v339_v37 = vadd.f32 %v890_v29, %v892_v30 }
  0xbd   :  { %v304_v24 = vpop.f32.mrf.mxu1  ;;  %440 = vmatpush.msra.mxu3 %v185_v25  ;;  %v223_v25 = vld [vmem:[#allocation7 + $0x1] sm:$0x1] }
  0xbe   :  { %v305_v27 = vadd.f32 %v304_v24, %v275_v23  ;;  %v352_v44 = vadd.f32 %v349_v34, %v348_v36  ;;  %v927_v23 = vld [vmem:[#allocation5 + $0x2e0] sm:$0xff]  ;;  %v200_v24 = vld [vmem:[#allocation5 + $0x250] sm:$0xff]  ;;  %v183_v34 = vld [vmem:[#allocation5 + $0x1c8] sm:$0xff] }
  0xbf   :  { %497 = vmatpush.msrb.mxu1 %v927_v23  ;;  %470 = vmatpush.msrb.mxu0 %v200_v24  ;;  %v197_v36 = vld [vmem:[#allocation5 + $0x238] sm:$0xff] }
  0xc0   :  { %636 = vmatpush.msrb.mxu2 %v200_v24 }
  0xc1   :  { %v333_v28 = vpop.f32.mrf.mxu2  ;;  %498 = vmatpush.msrb.mxu1 %v930_v26 }
  0xc2   :  { %v894_v31 = vadd.f32 %v333_v28, %v305_v27  ;;  %v199_v27 = vld [vmem:[#allocation5 + $0x248] sm:$0xff]  ;;  %v184_v28 = vld [vmem:[#allocation5 + $0x1d0] sm:$0xff] }
  0xc3   :  { %471 = vmatpush.msrb.mxu0 %v199_v27  ;;  %637 = vmatpush.msrb.mxu2 %v199_v27 }
  0xc4   :  { %v278_v32 = vpop.f32.mrf.mxu0  ;;  %v350_v38 = vmul.f32 %v894_v31, %v894_v31  ;;  %v340_v45 = vadd.f32 %v339_v37, %v894_v31  ;;  %441 = vmatpush.msra.mxu3 %v184_v28  ;;  %v182_v37 = vld [vmem:[#allocation5 + $0x1c0] sm:$0xff] }
  0xc5   :  { %v307_v33 = vpop.f32.mrf.mxu1 }
  0xc6   :  { %v308_v35 = vadd.f32 %v307_v33, %v278_v32  ;;  %v353_v47 = vadd.f32 %v352_v44, %v350_v38  ;;  %v933_v32 = vld [vmem:[#allocation5 + $0x2d0] sm:$0xff]  ;;  %v198_v33 = vld [vmem:[#allocation5 + $0x240] sm:$0xff]  ;;  %442 = vmatpush.msra.mxu3 %v183_v34 }
  0xc7   :  { %499 = vmatpush.msrb.mxu1 %v933_v32  ;;  %472 = vmatpush.msrb.mxu0 %v198_v33  ;;  %v939_v38 = vld [vmem:[#allocation5 + $0x2c0] sm:$0xff] }
  0xc8   :  { %638 = vmatpush.msrb.mxu2 %v198_v33  ;;  %443 = vmatpush.msra.mxu3 %v182_v37 }
  0xc9   :  { %v336_v42 = vpop.f32.mrf.mxu2  ;;  %473 = vmatpush.msrb.mxu0 %v197_v36 }
  0xca   :  { %v905_v46 = vadd.f32 %v336_v42, %v308_v35  ;;  %v936_v35 = vld [vmem:[#allocation5 + $0x2c8] sm:$0xff]  ;;  %639 = vmatpush.msrb.mxu2 %v197_v36  ;;  %v196_v42 = vld [vmem:[#allocation5 + $0x230] sm:$0xff] }
  0xcb   :  { %500 = vmatpush.msrb.mxu1 %v936_v35  ;;  %474 = vmatpush.msrb.mxu0 %v196_v42 }
  0xcc   :  { %v341_v48 = vadd.f32 %v340_v45, %v905_v46  ;;  %v351_v49 = vmul.f32 %v905_v46, %v905_v46  ;;  %640 = vmatpush.msrb.mxu2 %v196_v42  ;;  %v181_v45 = vld [vmem:[#allocation5 + $0x1b8] sm:$0xff] }
  0xcd   :  { %501 = vmatpush.msrb.mxu1 %v939_v38  ;;  %444 = vmatpush.msra.mxu3 %v181_v45 }
  0xce   :  { %v342_v50 = vrot.slane %v341_v48, 4  ;;  %v354_v51 = vadd.f32 %v353_v47, %v351_v49  ;;  %v942_v47 = vld [vmem:[#allocation5 + $0x2b8] sm:$0xff]  ;;  %v195_v49 = vld [vmem:[#allocation5 + $0x228] sm:$0xff] }
  0xcf   :  { %502 = vmatpush.msrb.mxu1 %v942_v47  ;;  %475 = vmatpush.msrb.mxu0 %v195_v49 }
  0xd0   :  { %v343_v52 = vadd.f32 %v342_v50, %v341_v48  ;;  %v355_v53 = vrot.slane %v354_v51, 4  ;;  %641 = vmatpush.msrb.mxu2 %v195_v49  ;;  %v180_v50 = vld [vmem:[#allocation5 + $0x1b0] sm:$0xff] }
  0xd1   :  { %445 = vmatpush.msra.mxu3 %v180_v50 }
  0xd2   :  { %v344_v54 = vrot.slane %v343_v52, 2  ;;  %v356_v55 = vadd.f32 %v355_v53, %v354_v51  ;;  %v946_v51 = vld [vmem:[#allocation5 + $0x2b0] sm:$0xff]  ;;  %v194_v53 = vld [vmem:[#allocation5 + $0x220] sm:$0xff] }
  0xd3   :  { %503 = vmatpush.msrb.mxu1 %v946_v51  ;;  %476 = vmatpush.msrb.mxu0 %v194_v53 }
  0xd4   :  { %v345_v56 = vadd.f32 %v344_v54, %v343_v52  ;;  %v357_v57 = vrot.slane %v356_v55, 2  ;;  %642 = vmatpush.msrb.mxu2 %v194_v53  ;;  %v179_v54 = vld [vmem:[#allocation5 + $0x1a8] sm:$0xff] }
  0xd5   :  { %446 = vmatpush.msra.mxu3 %v179_v54 }
  0xd6   :  { %v346_v58 = vrot.slane %v345_v56, 1  ;;  %v358_v59 = vadd.f32 %v357_v57, %v356_v55  ;;  %v951_v55 = vld [vmem:[#allocation5 + $0x2a8] sm:$0xff]  ;;  %v193_v57 = vld [vmem:[#allocation5 + $0x218] sm:$0xff] }
  0xd7   :  { %504 = vmatpush.msrb.mxu1 %v951_v55  ;;  %477 = vmatpush.msrb.mxu0 %v193_v57 }
  0xd8   :  { %v359_v61 = vrot.slane %v358_v59, 1  ;;  %v347_v63 = vadd.f32 %v346_v58, %v345_v56  ;;  %643 = vmatpush.msrb.mxu2 %v193_v57  ;;  %v178_v58 = vld [vmem:[#allocation5 + $0x1a0] sm:$0xff] }
  0xd9   :  { %447 = vmatpush.msra.mxu3 %v178_v58 }
  0xda   :  { %v360_v0 = vadd.f32 %v359_v61, %v358_v59  ;;  %v210_v59 = vld [vmem:[#allocation5 + $0x2a0] sm:$0xff] }
  0xdb   :  { %505 = vmatpush.msrb.mxu1 %v210_v59 }
  0xdc   :  { %v362_v1 = vsel %vm361_vm6, %v347_v63, %v360_v0  ;;  %v192_v63 = vld [vmem:[#allocation5 + $0x210] sm:$0xff]  ;;  %v177_v0 = vld [vmem:[#allocation5 + $0x198] sm:$0xff] }
  0xdd   :  { %363 = vrot.lane.b32.xlu0 %v362_v1, %s780_s21  ;;  %478 = vmatpush.msrb.mxu0 %v192_v63 }
  0xde   :  { %644 = vmatpush.msrb.mxu2 %v192_v63  ;;  %448 = vmatpush.msra.mxu3 %v177_v0 }
 0x14f   :  { %v364_v3 = vpop.permute.xlu0 %363 }
 0x150   :  { %v365_v4 = vadd.f32 %v364_v3, %v362_v1  ;;  %v209_v1 = vld [vmem:[#allocation5 + $0x298] sm:$0xff]  ;;  %v191_v3 = vld [vmem:[#allocation5 + $0x208] sm:$0xff] }
 0x151   :  { %506 = vmatpush.msrb.mxu1 %v209_v1  ;;  %479 = vmatpush.msrb.mxu0 %v191_v3 }
 0x152   :  { %366 = vrot.lane.b32.xlu0 %v365_v4, %s783_s2  ;;  %645 = vmatpush.msrb.mxu2 %v191_v3 }
 0x1c4   :  { %v367_v5 = vpop.permute.xlu0 %366 }
 0x1c5   :  { %v368_v6 = vadd.f32 %v367_v5, %v365_v4  ;;  %v176_v4 = vld [vmem:[#allocation5 + $0x190] sm:$0xff] }
 0x1c6   :  { %v208_v5 = vld [vmem:[#allocation5 + $0x290] sm:$0xff]  ;;  %449 = vmatpush.msra.mxu3 %v176_v4 }
 0x1c7   :  { %369 = vrot.lane.b32.xlu1 %v368_v6, %s784_s27  ;;  %507 = vmatpush.msrb.mxu1 %v208_v5 }
 0x1c9   :  { %508 = vmatpush.msrb.mxu1 %v207_v10 }
 0x1cb   :  { %509 = vmatpush.msrb.mxu1 %v206_v15 }
 0x239   :  { %v370_v7 = vpop.permute.xlu1 %369 }
 0x23a   :  { %v914_v8 = vadd.f32 %v370_v7, %v368_v6  ;;  %v190_v7 = vld [vmem:[#allocation5 + $0x200] sm:$0xff] }
 0x23b   :  { %480 = vmatpush.msrb.mxu0 %v190_v7  ;;  %646 = vmatpush.msrb.mxu2 %v190_v7 }
 0x23c   :  { %372 = vrot.lane.b32.xlu1 %v914_v8, %s785_s28 }
 0x2ae   :  { %v373_v44 = vpop.permute.xlu1 %372 }
 0x2af   :  { %v374_v48 = vadd.f32 %v373_v44, %v914_v8  ;;  %v175_v8 = vld [vmem:[#allocation5 + $0x188] sm:$0xff] }
 0x2b0   :  { %450 = vmatpush.msra.mxu3 %v175_v8 }
 0x2b1   :  { %v948_v52 = vmul.f32 0.001953125, %v374_v48 }
 0x2b2   :  { %451 = vmatpush.msra.mxu3 %v174_v12 }
 0x2b3   :  { %v376_v56 = vmul.f32 %v948_v52, %v948_v52 }
 0x2b4   :  { %647 = vmatpush.msrb.mxu3 %v918_v13  ;;  %v222_v13 = vld [vmem:[#allocation7] sm:$0x1] }
 0x2b5   :  { %v378_v61 = vrot.slane %v376_v56, 7 }
 0x2b6   :  { %648 = vmatpush.msrb.mxu3 %v921_v17 }
 0x2b7   :  { %v380_v6 = vsub.f32 %v948_v52, %v378_v61 }
 0x2b8   :  { %649 = vmatpush.msrb.mxu3 %v924_v20 }
 0x2b9   :  { %v381_v9 = vadd.f32 1e-05, %v380_v6 }
 0x2ba   :  { %650 = vmatpush.msrb.mxu3 %v927_v23 }
 0x2bb   :  { %672 = vrsqrt.f32 %v381_v9  ;;  %vm388_vm8 = vweird.f32 %v381_v9 }
 0x2bc   :  { %651 = vmatpush.msrb.mxu3 %v930_v26 }
 0x2be   :  { %652 = vmatpush.msrb.mxu3 %v933_v32 }
 0x2c0   :  { %653 = vmatpush.msrb.mxu3 %v936_v35 }
 0x2c1   :  { %v673_v16 = vpop.eup %672 }
 0x2c2   :  { %v383_v18 = vmul.f32 %v673_v16, %v381_v9  ;;  %vm389_vm7 = vweird.f32 %v673_v16  ;;  %654 = vmatpush.msrb.mxu3 %v939_v38 }
 0x2c3   :  { %vm390_vm9 = vmor %vm388_vm8, %vm389_vm7 }
 0x2c4   :  { %v384_v19 = vmul.f32 %v673_v16, %v383_v18  ;;  %655 = vmatpush.msrb.mxu3 %v942_v47 }
 0x2c6   :  { %v385_v21 = vmul.f32 0.5, %v384_v19  ;;  %656 = vmatpush.msrb.mxu3 %v946_v51 }
 0x2c8   :  { %v386_v22 = vsub.f32 1.5, %v385_v21  ;;  %657 = vmatpush.msrb.mxu3 %v951_v55 }
 0x2ca   :  { %v387_v24 = vmul.f32 %v673_v16, %v386_v22  ;;  %658 = vmatpush.msrb.mxu3 %v210_v59 }
 0x2cc   :  { %v391_v17 = vsel %vm390_vm9, %v673_v16, %v387_v24  ;;  %659 = vmatpush.msrb.mxu3 %v209_v1 }
 0x2cd   :  { %v393_v20 = vrot.slane %v391_v17, 1 }
 0x2ce   :  { %660 = vmatpush.msrb.mxu3 %v208_v5 }
 0x2cf   :  { %v395_v23 = vmul.f32 %v393_v20, %v222_v13 }
 0x2d0   :  { %661 = vmatpush.msrb.mxu3 %v207_v10 }
 0x2d1   :  { %v396_v26 = vmul.f32 %v395_v23, %v948_v52  ;;  %v398_v27 = vperm.slane %v395_v23, 0 }
 0x2d2   :  { %662 = vmatpush.msrb.mxu3 %v206_v15 }
 0x2d3   :  { %v397_v28 = vsub.f32 %v223_v25, %v396_v26  ;;  %v399_v32 = vmul.f32 %v398_v27, %v892_v30  ;;  %v401_v34 = vmul.f32 %v398_v27, %v894_v31  ;;  %v402_v35 = vmul.f32 %v398_v27, %v905_v46 }
 0x2d4   :  { %v400_v36 = vmul.f32 %v398_v27, %v890_v29 }
 0x2d5   :  { %v403_v33 = vperm.slane %v397_v28, 0 }
 0x2d7   :  { %v404_v37 = vadd.f32 %v403_v33, %v399_v32  ;;  %v406_v38 = vadd.f32 %v403_v33, %v401_v34  ;;  %v407_v42 = vadd.f32 %v403_v33, %v402_v35  ;;  %v405_v44 = vadd.f32 %v403_v33, %v400_v36 }
 0x2d9   :  { %v408_v45 = vmax.f32 %v404_v37, 0.0  ;;  %v410_v47 = vmax.f32 %v406_v38, 0.0  ;;  %v411_v48 = vmax.f32 %v407_v42, 0.0  ;;  %v409_v49 = vmax.f32 %v405_v44, 0.0 }
 0x2db   :  { %481 = vmatmul.f32.vlgmr.msrb.gmra.mxu0 %v408_v45  ;;  %487 = vmatmul.f32.vlgmr.msrb.gmra.mxu2 %v410_v47  ;;  %v412_v30 = vrot.slane %v408_v45, 7  ;;  %v415_v50 = vrot.slane %v411_v48, 7  ;;  %v424_v31 = vrot.slane %v408_v45, 1  ;;  %v425_v51 = vrot.slane %v409_v49, 1 }
 0x2dc   :  { %v413_v52 = vrot.slane %v409_v49, 7  ;;  %v426_v53 = vrot.slane %v410_v47, 1  ;;  %v414_v56 = vrot.slane %v410_v47, 7  ;;  %v427_v58 = vrot.slane %v411_v48, 1 }
 0x2dd   :  { %v419_v29 = vsel %vm230_vm1, %v415_v50, %v412_v30  ;;  %v430_v46 = vsel %vm243_vm0, %v424_v31, %v425_v51 }
 0x2de   :  { %627 = vmatmul.msk.f32.vlgmr.msra.gmra.mxu3 %vm840_vm2, %v419_v29  ;;  %510 = vmatmul.f32.vlgmr.msrb.gmra.mxu1 %v430_v46  ;;  %v418_v54 = vsel %vm230_vm1, %v412_v30, %v413_v52  ;;  %v429_v55 = vsel %vm243_vm0, %v425_v51, %v426_v53  ;;  %v417_v60 = vsel %vm230_vm1, %v413_v52, %v414_v56 }
 0x2df   :  { %v416_v57 = vsel %vm230_vm1, %v414_v56, %v415_v50  ;;  %v428_v59 = vsel %vm243_vm0, %v426_v53, %v427_v58  ;;  %v431_v2 = vsel %vm243_vm0, %v427_v58, %v424_v31 }
 0x2e3   :  { %484 = vmatmul.f32.gmra.mxu0 %v409_v49  ;;  %490 = vmatmul.f32.gmra.mxu2 %v411_v48 }
 0x2e6   :  { %455 = vmatmul.f32.gmra.mxu3 %v418_v54  ;;  %629 = vmatmul.msk.f32.gmra.mxu1 %vm853_vm3, %v429_v55 }
 0x2ee   :  { %628 = vmatmul.msk.f32.gmra.mxu3 %vm870_vm4, %v417_v60 }
 0x2f6   :  { %461 = vmatmul.f32.gmra.mxu3 %v416_v57 }
 0x2fe   :  { %516 = vmatmul.f32.vlgmr.msrb.gmra.mxu3 %v428_v59 }
 0x306   :  { %630 = vmatmul.msk.f32.gmra.mxu3 %vm879_vm5, %v431_v2 }
 0x358   :  { %v482_v11 = vpop.f32.mrf.mxu0 }
 0x35b   :  { %v511_v1 = vpop.f32.mrf.mxu1 }
 0x35e   :  { %v488_v4 = vpop.f32.mrf.mxu2 }
 0x360   :  { %v485_v5 = vpop.f32.mrf.mxu0 }
 0x361   :  { %v453_v61 = vpop.f32.mrf.mxu3 }
 0x362   :  { %v483_v7 = vadd.f32 %v482_v11, %v453_v61 }
 0x363   :  { %v514_v8 = vpop.f32.mrf.mxu1 }
 0x364   :  { %v999_v41 = vadd.f32 %v511_v1, %v483_v7 }
 0x366   :  { %v491_v16 = vpop.f32.mrf.mxu2  ;;  %v532_v18 = vmul.f32 %v999_v41, %v999_v41 }
 0x369   :  { %v456_v63 = vpop.f32.mrf.mxu3 }
 0x36a   :  { %v486_v6 = vadd.f32 %v485_v5, %v456_v63 }
 0x36c   :  { %v997_v10 = vadd.f32 %v514_v8, %v486_v6 }
 0x36e   :  { %v533_v14 = vmul.f32 %v997_v10, %v997_v10  ;;  %v523_v21 = vadd.f32 %v997_v10, %v999_v41 }
 0x370   :  { %v536_v17 = vadd.f32 %v533_v14, %v532_v18 }
 0x371   :  { %v459_v0 = vpop.f32.mrf.mxu3 }
 0x372   :  { %v489_v12 = vadd.f32 %v488_v4, %v459_v0  ;;  %v224_v0 = vld [vmem:[#allocation7 + $0x2] sm:$0x1]  ;;  %v225_v4 = vld [vmem:[#allocation7 + $0x3] sm:$0x1] }
 0x379   :  { %v462_v3 = vpop.f32.mrf.mxu3 }
 0x37a   :  { %v492_v19 = vadd.f32 %v491_v16, %v462_v3 }
 0x381   :  { %v517_v9 = vpop.f32.mrf.mxu3 }
 0x382   :  { %v1001_v15 = vadd.f32 %v517_v9, %v489_v12 }
 0x384   :  { %v534_v22 = vmul.f32 %v1001_v15, %v1001_v15  ;;  %v524_v13 = vadd.f32 %v523_v21, %v1001_v15 }
 0x386   :  { %v537_v23 = vadd.f32 %v536_v17, %v534_v22 }
 0x389   :  { %v520_v24 = vpop.f32.mrf.mxu3 }
 0x38a   :  { %v521_v20 = vadd.f32 %v520_v24, %v492_v19 }
 0x38c   :  { %v525_v25 = vadd.f32 %v524_v13, %v521_v20  ;;  %v535_v26 = vmul.f32 %v521_v20, %v521_v20 }
 0x38e   :  { %v526_v27 = vrot.slane %v525_v25, 4  ;;  %v538_v28 = vadd.f32 %v537_v23, %v535_v26 }
 0x390   :  { %v527_v32 = vadd.f32 %v526_v27, %v525_v25  ;;  %v539_v33 = vrot.slane %v538_v28, 4 }
 0x392   :  { %v528_v34 = vrot.slane %v527_v32, 2  ;;  %v540_v35 = vadd.f32 %v539_v33, %v538_v28 }
 0x394   :  { %v529_v36 = vadd.f32 %v528_v34, %v527_v32  ;;  %v541_v37 = vrot.slane %v540_v35, 2 }
 0x396   :  { %v530_v38 = vrot.slane %v529_v36, 1  ;;  %v542_v42 = vadd.f32 %v541_v37, %v540_v35 }
 0x398   :  { %v543_v44 = vrot.slane %v542_v42, 1  ;;  %v531_v45 = vadd.f32 %v530_v38, %v529_v36 }
 0x39a   :  { %v544_v47 = vadd.f32 %v543_v44, %v542_v42 }
 0x39c   :  { %v545_v48 = vsel %vm361_vm6, %v531_v45, %v544_v47 }
 0x39d   :  { %546 = vrot.lane.b32.xlu2 %v545_v48, %s780_s21 }
 0x3f7   :  { %v547_v49 = vpop.permute.xlu2 %546 }
 0x3f8   :  { %v548_v30 = vadd.f32 %v547_v49, %v545_v48 }
 0x3fa   :  { %549 = vrot.lane.b32.xlu2 %v548_v30, %s783_s2 }
 0x454   :  { %v550_v50 = vpop.permute.xlu2 %549 }
 0x455   :  { %v551_v31 = vadd.f32 %v550_v50, %v548_v30 }
 0x457   :  { %552 = vrot.lane.b32.xlu0 %v551_v31, %s784_s27 }
 0x4c9   :  { %v553_v51 = vpop.permute.xlu0 %552 }
 0x4ca   :  { %v554_v29 = vadd.f32 %v553_v51, %v551_v31 }
 0x4cc   :  { %555 = vrot.lane.b32.xlu1 %v554_v29, %s785_s28 }
 0x53e   :  { %v556_v46 = vpop.permute.xlu1 %555 }
 0x53f   :  { %v557_v52 = vadd.f32 %v556_v46, %v554_v29 }
 0x541   :  { %v558_v53 = vmul.f32 0.001953125, %v557_v52 }
 0x543   :  { %v559_v54 = vmul.f32 %v558_v53, %v558_v53 }
 0x545   :  { %v561_v55 = vrot.slane %v559_v54, 7 }
 0x547   :  { %v563_v56 = vsub.f32 %v558_v53, %v561_v55 }
 0x549   :  { %v564_v60 = vadd.f32 1e-05, %v563_v56 }
 0x54b   :  { %674 = vrsqrt.f32 %v564_v60  ;;  %vm571_vm11 = vweird.f32 %v564_v60 }
 0x551   :  { %v675_v57 = vpop.eup %674 }
 0x552   :  { %v566_v58 = vmul.f32 %v675_v57, %v564_v60  ;;  %vm572_vm10 = vweird.f32 %v675_v57 }
 0x553   :  { %vm573_vm12 = vmor %vm571_vm11, %vm572_vm10 }
 0x554   :  { %v567_v59 = vmul.f32 %v675_v57, %v566_v58 }
 0x556   :  { %v568_v2 = vmul.f32 0.5, %v567_v59 }
 0x558   :  { %v569_v61 = vsub.f32 1.5, %v568_v2 }
 0x55a   :  { %v570_v63 = vmul.f32 %v675_v57, %v569_v61 }
 0x55c   :  { %v574_v11 = vsel %vm573_vm12, %v675_v57, %v570_v63 }
 0x55d   :  { %v576_v1 = vrot.slane %v574_v11, 1 }
 0x55f   :  { %v578_v3 = vmul.f32 %v576_v1, %v224_v0 }
 0x561   :  { %v579_v5 = vmul.f32 %v578_v3, %v558_v53  ;;  %v581_v6 = vperm.slane %v578_v3, 0 }
 0x563   :  { %v580_v7 = vsub.f32 %v225_v4, %v579_v5  ;;  %v582_v8 = vmul.f32 %v581_v6, %v999_v41  ;;  %v583_v9 = vmul.f32 %v581_v6, %v997_v10  ;;  %v584_v12 = vmul.f32 %v581_v6, %v1001_v15 }
 0x564   :  { %v585_v14 = vmul.f32 %v581_v6, %v521_v20 }
 0x565   :  { %v586_v16 = vperm.slane %v580_v7, 0 }
 0x567   :  { %v587_v18 = vadd.f32 %v586_v16, %v582_v8  ;;  %v588_v19 = vadd.f32 %v586_v16, %v583_v9  ;;  %v589_v21 = vadd.f32 %v586_v16, %v584_v12  ;;  %v590_v22 = vadd.f32 %v586_v16, %v585_v14 }
 0x569   :  { %v591_v24 = vadd.f32 %v587_v18, %v822_v39  ;;  %v592_v13 = vadd.f32 %v588_v19, %v824_v40  ;;  %v593_v17 = vadd.f32 %v589_v21, %v846_v62  ;;  %v594_v23 = vadd.f32 %v590_v22, %v828_v43 }
 0x56b   :  { %v595_v25 = vmax.f32 %v591_v24, 0.0  ;;  %v596_v41 = vmax.f32 %v592_v13, 0.0  ;;  %v597_v26 = vmax.f32 %v593_v17, 0.0  ;;  %v598_v10 = vmax.f32 %v594_v23, 0.0 }
 0x56d   :  { %599 = vst [vmem:[#allocation8] sm:$0xff] %v595_v25 }
 0x56e   :  { %600 = vst [vmem:[#allocation8 + $0x8] sm:$0xff] %v596_v41 }
 0x56f   :  { %601 = vst [vmem:[#allocation8 + $0x10] sm:$0xff] %v597_v26 }
 0x570   :  { %602 = vst [vmem:[#allocation8 + $0x18] sm:$0xff] %v598_v10 }
 0x571   :  { %615 = dma.vmem_to_hbm [thread:$0]  %s608_s30, 512, %s610_s6, [#allocation4], %s779_s20, %s779_s20, %s780_s21  }
 0x572   :  { %776 = dma.done.wait [#allocation4], 512  }
 0x573   :  { %777 = vsyncadd [#allocation4], 4294966784 }
 0x574   :  { %620 = vsyncpa [#allocation3], 1 }
 0x575   :  { %621 = vsyncpa [#allocation6], 1 }
 0x576   :  { %622 = vsyncpa [#allocation4], 1 }

</bundles_post_ra>
